<compile_context>
chip_gen: v7x
topology: tpu7x:2x2x1
jax: 0.10.0
libtpu: 0.0.40
codegen_flags: <defaults>
</compile_context>

<pallas_src>
import math

import jax
import jax.numpy as jnp
from jax.experimental import pallas as pl
from jax.experimental.pallas import tpu as pltpu

DNA_CHROMOSOME_LENS = {'chry': 72}
RNA_CHROMOSOME_LENS = {'chry': 22}

LANE = 128
SUBLANE_BF16 = 16     # bf16 sublane packing -> keep batch tiles 16-aligned


def exponential_linspace_int(start, end, num, divisible_by=1):
    """Standard (Enformer-style) exponentially spaced integer sequence."""
    def _round(x):
        return int(round(x / divisible_by) * divisible_by)
    if num == 1:
        return [_round(start)]
    base = math.exp(math.log(end / start) / (num - 1))
    return [_round(start * base ** i) for i in range(num)]


def _round_up(x, m):
    return ((x + m - 1) // m) * m


def _pad2(a, rows, cols):
    """Zero-pad a 2-D array to (rows, cols)."""
    return jnp.zeros((rows, cols), a.dtype).at[:a.shape[0], :a.shape[1]].set(a)


# ----------------------------- Pallas kernel --------------------------------

def _mlp_kernel(x_ref, w1_ref, b1_ref, w2_ref, b2_ref, w3_ref, b3_ref, o_ref):
    # Cast the f32 activation tile to bf16 in-kernel (VPU cast, hidden under
    # the DMA) instead of a separate XLA pad/cast pass over HBM.
    x = x_ref[...].astype(w1_ref.dtype)
    # Layer 1: bf16 MXU matmul, f32 accumulation; bias + ReLU epilogue in f32.
    h = jnp.dot(x, w1_ref[...], preferred_element_type=jnp.float32)
    h = jnp.maximum(h + b1_ref[...], 0.0)
    # Layer 2
    h = jnp.dot(h.astype(w2_ref.dtype), w2_ref[...],
                preferred_element_type=jnp.float32)
    h = jnp.maximum(h + b2_ref[...], 0.0)
    # Dropout(p=0.04) is identity at inference time (eval mode).
    # Layer 3: Linear only (trailing ReLU was popped in __init__).
    out = jnp.dot(h.astype(w3_ref.dtype), w3_ref[...],
                  preferred_element_type=jnp.float32)
    o_ref[...] = (out + b3_ref[...]).astype(o_ref.dtype)


def _choose_batch_tile(batch, tm_cap=2048):
    """Balanced batch tiles; >=2 tiles when possible so v7x uses both TCs."""
    if batch <= 2 * SUBLANE_BF16:
        # Single block equal to the full (tiny) batch dim — always legal.
        return batch, 1
    num_tiles = max(pl.cdiv(batch, tm_cap), 2)
    tm = _round_up(pl.cdiv(batch, num_tiles), SUBLANE_BF16)
    return tm, pl.cdiv(batch, tm)


def silly_dna2rna_forward(x, params, *, tm=None, compute_dtype=jnp.bfloat16,
                          out_dtype=jnp.bfloat16, return_padded=False):
    (w1, b1), (w2, b2), (w3, b3) = params
    batch, in_dim = x.shape
    out_dim = w3.shape[1]

    # K of layer 1 stays un-padded (matches x's last dim); hidden/out feature
    # dims are lane-aligned to 128 with exact zero padding.
    d0 = in_dim
    d1 = _round_up(w1.shape[1], LANE)
    d2 = _round_up(w2.shape[1], LANE)
    d3 = _round_up(out_dim, LANE)

    if tm is None:
        tm, num_tiles = _choose_batch_tile(batch)
    else:
        num_tiles = pl.cdiv(batch, tm)
    grid = (num_tiles,)

    # One-time weight/bias prep (tiny, ~100 KiB total).
    w1p = _pad2(w1, d0, d1).astype(compute_dtype)
    w2p = _pad2(w2, d1, d2).astype(compute_dtype)
    w3p = _pad2(w3, d2, d3).astype(compute_dtype)
    b1p = _pad2(b1, 1, d1).astype(jnp.float32)
    b2p = _pad2(b2, 1, d2).astype(jnp.float32)
    b3p = _pad2(b3, 1, d3).astype(jnp.float32)

    resident = lambda i: (0, 0)          # weights/biases stay VMEM-resident
    tiled = lambda i: (i, 0)             # batch-tiled activations / output

    w_item = jnp.dtype(compute_dtype).itemsize
    cost = pl.CostEstimate(
        flops=2 * batch * (d0 * d1 + d1 * d2 + d2 * d3),
        transcendentals=0,
        bytes_accessed=(batch * d0 * x.dtype.itemsize                 # x in (f32)
                        + batch * d3 * jnp.dtype(out_dtype).itemsize  # out (bf16)
                        + (d0 * d1 + d1 * d2 + d2 * d3) * w_item      # weights
                        + (d1 + d2 + d3) * 4),                        # biases
    )

    out = pl.pallas_call(
        _mlp_kernel,
        out_shape=jax.ShapeDtypeStruct((batch, d3), out_dtype),
        grid=grid,
        in_specs=[
            pl.BlockSpec((tm, d0), tiled),       # x (un-padded f32)
            pl.BlockSpec((d0, d1), resident),    # w1
            pl.BlockSpec((1, d1), resident),     # b1
            pl.BlockSpec((d1, d2), resident),    # w2
            pl.BlockSpec((1, d2), resident),     # b2
            pl.BlockSpec((d2, d3), resident),    # w3
            pl.BlockSpec((1, d3), resident),     # b3
        ],
        out_specs=pl.BlockSpec((tm, d3), tiled),
        compiler_params=pltpu.CompilerParams(
            dimension_semantics=("parallel",)),
        cost_estimate=cost,
    )(x, w1p, b1p, w2p, b2p, w3p, b3p)

    if return_padded:
        # Lane-dense (batch, 128) output; columns out_dim..127 are exact zeros.
        return out
    return out[:, :out_dim]


# --------------------------- parameter construction -------------------------

def init_linear(key, in_dim, out_dim):
    """Deterministic init mimicking torch.nn.Linear defaults (uniform ±1/sqrt(fan_in)).
    Weight stored transposed as (in_dim, out_dim); bias as (1, out_dim)."""
    kw, kb = jax.random.split(key)
    bound = 1.0 / math.sqrt(in_dim)
    w = jax.random.uniform(kw, (in_dim, out_dim), jnp.float32, -bound, bound)
    b = jax.random.uniform(kb, (1, out_dim), jnp.float32, -bound, bound)
    return w, b


def build_params(chrom, depth, width_factor, key):
    in_dim = DNA_CHROMOSOME_LENS[chrom]
    out_dim = RNA_CHROMOSOME_LENS[chrom]
    model_dims = exponential_linspace_int(in_dim, int(width_factor * in_dim), depth)
    model_dims.append(out_dim)
    keys = jax.random.split(key, len(model_dims) - 1)
    params = []
    for i in range(len(model_dims) - 1):
        params.append(init_linear(keys[i], model_dims[i], model_dims[i + 1]))
    return params, model_dims


def _reference_bf16(x, params):
    """Pure-JAX reference mirroring the kernel numerics (bf16 ops, f32 acc)."""
    ref = x.astype(jnp.bfloat16)
    for li, (w, b) in enumerate(params):
        ref = jnp.dot(ref, w.astype(jnp.bfloat16),
                      preferred_element_type=jnp.float32) + b
        if li < len(params) - 1:
            ref = jnp.maximum(ref, 0.0).astype(jnp.bfloat16)
    return ref.astype(jnp.bfloat16)


def _reference_f32(x, params):
    ref = x
    for li, (w, b) in enumerate(params):
        ref = ref @ w + b
        if li < len(params) - 1:
            ref = jnp.maximum(ref, 0.0)
    return ref


# TODO(synk): use_bn=True path (BatchNorm1d) not implemented; it is only an
# identity at inference with default running stats AND default affine params.
# TODO(synk): constant_output branch (chrom in RNA but not DNA lens) is a
# learned-constant return with no compute; not a kernel, so not translated.
# TODO(synk): Dropout is treated as identity (inference mode only).


if __name__ == "__main__":
    key = jax.random.PRNGKey(0)
    k_params, k_x, k_x2 = jax.random.split(key, 3)

    chrom, depth, width_factor = "chry", 3, 0.5
    params, model_dims = build_params(chrom, depth, width_factor, k_params)
    out_dim = RNA_CHROMOSOME_LENS[chrom]

    # --- small single-tile case -------------------------------------------
    batch = 8
    x = jax.random.normal(k_x, (batch, model_dims[0]), jnp.float32)

    out = silly_dna2rna_forward(x, params)
    out = jax.block_until_ready(out)
    assert out.shape == (batch, out_dim)
    assert out.dtype == jnp.bfloat16

    ref = _reference_bf16(x, params)
    assert jnp.allclose(out.astype(jnp.float32), ref.astype(jnp.float32),
                        atol=2e-2, rtol=2e-2)
    assert jnp.allclose(out.astype(jnp.float32), _reference_f32(x, params),
                        atol=1e-1, rtol=1e-1)

    # --- multi-tile case with a partial last block (no batch padding) ------
    batch2 = 40
    x2 = jax.random.normal(k_x2, (batch2, model_dims[0]), jnp.float32)
    out2 = jax.block_until_ready(silly_dna2rna_forward(x2, params))
    assert out2.shape == (batch2, out_dim)
    ref2 = _reference_bf16(x2, params)
    assert jnp.allclose(out2.astype(jnp.float32), ref2.astype(jnp.float32),
                        atol=2e-2, rtol=2e-2)
    assert jnp.allclose(out2.astype(jnp.float32), _reference_f32(x2, params),
                        atol=1e-1, rtol=1e-1)

    print("KERNEL_OK")
</pallas_src>

<mosaic_0001>
module attributes {stable_mosaic.version = 11 : i64} {
  func.func @_mlp_kernel(%arg0: i32, %arg1: memref<8x72xf32, #tpu.memory_space<vmem>>, %arg2: memref<72x128xbf16, #tpu.memory_space<vmem>>, %arg3: memref<1x128xf32, #tpu.memory_space<vmem>>, %arg4: memref<128x128xbf16, #tpu.memory_space<vmem>>, %arg5: memref<1x128xf32, #tpu.memory_space<vmem>>, %arg6: memref<128x128xbf16, #tpu.memory_space<vmem>>, %arg7: memref<1x128xf32, #tpu.memory_space<vmem>>, %arg8: memref<8x128xbf16, #tpu.memory_space<vmem>>) attributes {dimension_semantics = [#tpu.dimension_semantics<parallel>], iteration_bounds = array<i64: 1>, scalar_prefetch = 0 : i64, scratch_operands = 0 : i64, tpu.core_type = #tpu.core_type<tc>, window_params = [{transform_indices = @transform_0, window_bounds = array<i64: 8, 72>}, {pipeline_mode = #tpu.pipeline_mode<synchronous>, transform_indices = @transform_1, window_bounds = array<i64: 72, 128>}, {pipeline_mode = #tpu.pipeline_mode<synchronous>, transform_indices = @transform_2, window_bounds = array<i64: 1, 128>}, {pipeline_mode = #tpu.pipeline_mode<synchronous>, transform_indices = @transform_3, window_bounds = array<i64: 128, 128>}, {pipeline_mode = #tpu.pipeline_mode<synchronous>, transform_indices = @transform_4, window_bounds = array<i64: 1, 128>}, {pipeline_mode = #tpu.pipeline_mode<synchronous>, transform_indices = @transform_5, window_bounds = array<i64: 128, 128>}, {pipeline_mode = #tpu.pipeline_mode<synchronous>, transform_indices = @transform_6, window_bounds = array<i64: 1, 128>}, {transform_indices = @transform_7, window_bounds = array<i64: 8, 128>}]} {
    %c0 = arith.constant 0 : index
    %c0_0 = arith.constant 0 : index
    %0 = vector.load %arg1[%c0, %c0_0] : memref<8x72xf32, #tpu.memory_space<vmem>>, vector<8x72xf32>
    %1 = arith.truncf %0 : vector<8x72xf32> to vector<8x72xbf16>
    %c0_1 = arith.constant 0 : index
    %c0_2 = arith.constant 0 : index
    %2 = vector.load %arg2[%c0_1, %c0_2] : memref<72x128xbf16, #tpu.memory_space<vmem>>, vector<72x128xbf16>
    %cst = arith.constant dense<0.000000e+00> : vector<8x128xf32>
    %3 = tpu.matmul %1, %2, %cst {dimension_numbers = #tpu.dot_dimension_numbers<[1], [0], [0], [1], [0, 0, 1, 1], [], []>} : vector<8x72xbf16>, vector<72x128xbf16>, vector<8x128xf32> -> vector<8x128xf32>
    %c0_3 = arith.constant 0 : index
    %c0_4 = arith.constant 0 : index
    %4 = vector.load %arg3[%c0_3, %c0_4] : memref<1x128xf32, #tpu.memory_space<vmem>>, vector<1x128xf32>
    %5 = vector.broadcast %4 : vector<1x128xf32> to vector<8x128xf32>
    %6 = arith.addf %3, %5 : vector<8x128xf32>
    %cst_5 = arith.constant 0.000000e+00 : f32
    %7 = vector.broadcast %cst_5 : f32 to vector<8x128xf32>
    %8 = arith.maximumf %6, %7 : vector<8x128xf32>
    %9 = arith.truncf %8 : vector<8x128xf32> to vector<8x128xbf16>
    %c0_6 = arith.constant 0 : index
    %c0_7 = arith.constant 0 : index
    %10 = vector.load %arg4[%c0_6, %c0_7] : memref<128x128xbf16, #tpu.memory_space<vmem>>, vector<128x128xbf16>
    %cst_8 = arith.constant dense<0.000000e+00> : vector<8x128xf32>
    %11 = tpu.matmul %9, %10, %cst_8 {dimension_numbers = #tpu.dot_dimension_numbers<[1], [0], [0], [1], [0, 0, 1, 1], [], []>} : vector<8x128xbf16>, vector<128x128xbf16>, vector<8x128xf32> -> vector<8x128xf32>
    %c0_9 = arith.constant 0 : index
    %c0_10 = arith.constant 0 : index
    %12 = vector.load %arg5[%c0_9, %c0_10] : memref<1x128xf32, #tpu.memory_space<vmem>>, vector<1x128xf32>
    %13 = vector.broadcast %12 : vector<1x128xf32> to vector<8x128xf32>
    %14 = arith.addf %11, %13 : vector<8x128xf32>
    %cst_11 = arith.constant 0.000000e+00 : f32
    %15 = vector.broadcast %cst_11 : f32 to vector<8x128xf32>
    %16 = arith.maximumf %14, %15 : vector<8x128xf32>
    %17 = arith.truncf %16 : vector<8x128xf32> to vector<8x128xbf16>
    %c0_12 = arith.constant 0 : index
    %c0_13 = arith.constant 0 : index
    %18 = vector.load %arg6[%c0_12, %c0_13] : memref<128x128xbf16, #tpu.memory_space<vmem>>, vector<128x128xbf16>
    %cst_14 = arith.constant dense<0.000000e+00> : vector<8x128xf32>
    %19 = tpu.matmul %17, %18, %cst_14 {dimension_numbers = #tpu.dot_dimension_numbers<[1], [0], [0], [1], [0, 0, 1, 1], [], []>} : vector<8x128xbf16>, vector<128x128xbf16>, vector<8x128xf32> -> vector<8x128xf32>
    %c0_15 = arith.constant 0 : index
    %c0_16 = arith.constant 0 : index
    %20 = vector.load %arg7[%c0_15, %c0_16] : memref<1x128xf32, #tpu.memory_space<vmem>>, vector<1x128xf32>
    %21 = vector.broadcast %20 : vector<1x128xf32> to vector<8x128xf32>
    %22 = arith.addf %19, %21 : vector<8x128xf32>
    %23 = arith.truncf %22 : vector<8x128xf32> to vector<8x128xbf16>
    %c0_17 = arith.constant 0 : index
    %c0_18 = arith.constant 0 : index
    %24 = vector.load %arg8[%c0_17, %c0_18] : memref<8x128xbf16, #tpu.memory_space<vmem>>, vector<8x128xbf16>
    tpu.vector_store %arg8[%c0_17, %c0_18], %23 {strides = array<i32>} : memref<8x128xbf16, #tpu.memory_space<vmem>>, vector<8x128xbf16>,
    return
  }
  func.func @transform_0(%arg0: i32) -> (i32, i32) {
    %c0_i32 = arith.constant 0 : i32
    %c0_i32_0 = arith.constant 0 : i32
    return %arg0, %c0_i32 : i32, i32
  }
  func.func @transform_1(%arg0: i32) -> (i32, i32) {
    %c0_i32 = arith.constant 0 : i32
    %c0_i32_0 = arith.constant 0 : i32
    %c0_i32_1 = arith.constant 0 : i32
    return %c0_i32, %c0_i32_0 : i32, i32
  }
  func.func @transform_2(%arg0: i32) -> (i32, i32) {
    %c0_i32 = arith.constant 0 : i32
    %c0_i32_0 = arith.constant 0 : i32
    %c0_i32_1 = arith.constant 0 : i32
    return %c0_i32, %c0_i32_0 : i32, i32
  }
  func.func @transform_3(%arg0: i32) -> (i32, i32) {
    %c0_i32 = arith.constant 0 : i32
    %c0_i32_0 = arith.constant 0 : i32
    %c0_i32_1 = arith.constant 0 : i32
    return %c0_i32, %c0_i32_0 : i32, i32
  }
  func.func @transform_4(%arg0: i32) -> (i32, i32) {
    %c0_i32 = arith.constant 0 : i32
    %c0_i32_0 = arith.constant 0 : i32
    %c0_i32_1 = arith.constant 0 : i32
    return %c0_i32, %c0_i32_0 : i32, i32
  }
  func.func @transform_5(%arg0: i32) -> (i32, i32) {
    %c0_i32 = arith.constant 0 : i32
    %c0_i32_0 = arith.constant 0 : i32
    %c0_i32_1 = arith.constant 0 : i32
    return %c0_i32, %c0_i32_0 : i32, i32
  }
  func.func @transform_6(%arg0: i32) -> (i32, i32) {
    %c0_i32 = arith.constant 0 : i32
    %c0_i32_0 = arith.constant 0 : i32
    %c0_i32_1 = arith.constant 0 : i32
    return %c0_i32, %c0_i32_0 : i32, i32
  }
  func.func @transform_7(%arg0: i32) -> (i32, i32) {
    %c0_i32 = arith.constant 0 : i32
    %c0_i32_0 = arith.constant 0 : i32
    return %arg0, %c0_i32 : i32, i32
  }
}

</mosaic_0001>

<bundles_post_ra>
// kernel: tpu_custom_call.1
= control target key start
LH: loop header
LB: loop body
LE: loop exit
PB: predicated region body
PF: predicated region fallthrough
CT: control target
= control target key end

     0   :  { %12 = vsyncpa [#allocation3], 0  ;;  %s824_s0 = inlined_call_operand.hbm [shape: f32[8,72], index: 0, kind: input, shape index: {}]   ;;  %s825_s1 = inlined_call_operand.hbm [shape: bf16[72,128], index: 1, kind: input, shape index: {}]   ;;  %s826_s2 = inlined_call_operand.vmem [shape: f32[1,128], index: 2, kind: input, shape index: {}]   ;;  %s827_s3 = inlined_call_operand.hbm [shape: bf16[128,128], index: 3, kind: input, shape index: {}]   ;;  %s828_s4 = inlined_call_operand.vmem [shape: f32[1,128], index: 4, kind: input, shape index: {}]   ;;  %s829_s5 = inlined_call_operand.hbm [shape: bf16[128,128], index: 5, kind: input, shape index: {}]   ;;  %s830_s6 = inlined_call_operand.vmem [shape: f32[1,128], index: 6, kind: input, shape index: {}]   ;;  %s831_s7 = inlined_call_operand.hbm [shape: bf16[8,128], index: 7, kind: output, shape index: {}]  }
   0x1   :  { %13 = vsyncpa [#allocation6], 0 }
   0x2   :  { %14 = vsyncpa [#allocation9], 0 }
   0x3   :  { %15 = vsyncpa [#allocation4], 0  ;;  %s670_s24 = smov [#allocation5]   ;;  %s552_s28 = scalar_lea.hbm %s825_s1, 576 }
   0x4   :  { %s31_s25 = sshll.u32 %s670_s24, 4  ;;  %p553_p0 = scmp.ne.s32.totalorder %s825_s1, %s552_s28  ;;  %s32_s25 = int_to_ptr.vmem [resolvable:$true] %s31_s25 }
   0x5   :  { %p556_p1 = scmp.lt.u32.totalorder %s552_s28, %s825_s1 }
   0x7   :  { %p558_p2 = pnand %p556_p1, %p553_p0 }
   0x9   :  { %561 = shalt.err (!%p558_p2)
}
   0xa   :  { %s562_s10 = scalar_lea.vmem %s32_s25, 576  ;;  %p567_p4 = scmp.lt.s32.totalorder %s32_s25, %s32_s25 }
   0xb   :  { %p563_p3 = scmp.ne.s32.totalorder %s32_s25, %s562_s10  ;;  %p568_p5 = scmp.lt.s32.totalorder %s562_s10, %s562_s10 }
   0xd   :  { %p569_p6 = por %p568_p5, %p567_p4 }
   0xf   :  { %p570_p7 = pnand %p569_p6, %p563_p3 }
  0x11   :  { %573 = shalt.err (!%p570_p7)
}
  0x12   :  { %s671_s11 = smov 64   ;;  %s672_s12 = smov 4  }
  0x13   :  { %37 = dma.hbm_to_vmem [thread:$0]  %s825_s1, 576, %s32_s25, [#allocation6], %s671_s11, %s671_s11, %s672_s12  }
  0x14   :  { %s673_s15 = smov [#allocation2]   ;;  %s674_s17 = smov [#allocation7]  }
  0x15   :  { %s22_s16 = sshll.u32 %s673_s15, 4  ;;  %s45_s18 = sshll.u32 %s674_s17, 4  ;;  %s23_s16 = int_to_ptr.vmem [resolvable:$true] %s22_s16  ;;  %s46_s18 = int_to_ptr.vmem [resolvable:$true] %s45_s18 }
  0x16   :  { %s574_s21 = scalar_lea.hbm %s824_s0, 128 }
  0x17   :  { %p575_p8 = scmp.ne.s32.totalorder %s824_s0, %s574_s21  ;;  %p578_p9 = scmp.lt.u32.totalorder %s574_s21, %s824_s0 }
  0x19   :  { %p580_p10 = pnand %p578_p9, %p575_p8 }
  0x1b   :  { %583 = shalt.err (!%p580_p10)
}
  0x1c   :  { %s584_s1 = scalar_lea.vmem %s23_s16, 128  ;;  %p589_p12 = scmp.lt.s32.totalorder %s23_s16, %s23_s16 }
  0x1d   :  { %p585_p11 = scmp.ne.s32.totalorder %s23_s16, %s584_s1  ;;  %p590_p13 = scmp.lt.s32.totalorder %s584_s1, %s584_s1 }
  0x1f   :  { %p591_p0 = por %p590_p13, %p589_p12 }
  0x21   :  { %p592_p1 = pnand %p591_p0, %p585_p11 }
  0x23   :  { %595 = shalt.err (!%p592_p1)
}
  0x24   :  { %25 = dma.hbm_to_vmem [thread:$0]  %s824_s0, 128, %s23_s16, [#allocation3]  }
  0x25   :  { %s596_s30 = scalar_lea.hbm %s827_s3, 1024 }
  0x26   :  { %p597_p2 = scmp.ne.s32.totalorder %s827_s3, %s596_s30  ;;  %p600_p3 = scmp.lt.u32.totalorder %s596_s30, %s827_s3 }
  0x28   :  { %p602_p4 = pnand %p600_p3, %p597_p2 }
  0x2a   :  { %605 = shalt.err (!%p602_p4)
}
  0x2b   :  { %s606_s14 = scalar_lea.vmem %s46_s18, 1024  ;;  %p611_p6 = scmp.lt.s32.totalorder %s46_s18, %s46_s18 }
  0x2c   :  { %p607_p5 = scmp.ne.s32.totalorder %s46_s18, %s606_s14  ;;  %p612_p7 = scmp.lt.s32.totalorder %s606_s14, %s606_s14 }
  0x2e   :  { %p613_p8 = por %p612_p7, %p611_p6 }
  0x30   :  { %p614_p9 = pnand %p613_p8, %p607_p5 }
  0x32   :  { %617 = shalt.err (!%p614_p9)
}
  0x33   :  { %51 = dma.hbm_to_vmem [thread:$0]  %s827_s3, 1024, %s46_s18, [#allocation6], %s671_s11, %s671_s11, %s672_s12  }
  0x34   :  { %s675_s16 = smov [#allocation8]   ;;  %s618_s21 = scalar_lea.hbm %s829_s5, 1024 }
  0x35   :  { %s59_s17 = sshll.u32 %s675_s16, 4  ;;  %p619_p10 = scmp.ne.s32.totalorder %s829_s5, %s618_s21  ;;  %s60_s17 = int_to_ptr.vmem [resolvable:$true] %s59_s17 }
  0x36   :  { %p622_p11 = scmp.lt.u32.totalorder %s618_s21, %s829_s5 }
  0x38   :  { %p624_p12 = pnand %p622_p11, %p619_p10 }
  0x3a   :  { %627 = shalt.err (!%p624_p12)
}
  0x3b   :  { %s628_s1 = scalar_lea.vmem %s60_s17, 1024  ;;  %p633_p0 = scmp.lt.s32.totalorder %s60_s17, %s60_s17 }
  0x3c   :  { %p629_p13 = scmp.ne.s32.totalorder %s60_s17, %s628_s1  ;;  %p634_p1 = scmp.lt.s32.totalorder %s628_s1, %s628_s1 }
  0x3e   :  { %p635_p2 = por %p634_p1, %p633_p0 }
  0x40   :  { %p636_p3 = pnand %p635_p2, %p629_p13 }
  0x42   :  { %639 = shalt.err (!%p636_p3)
}
  0x43   :  { %65 = dma.hbm_to_vmem [thread:$0]  %s829_s5, 1024, %s60_s17, [#allocation9], %s671_s11, %s671_s11, %s672_s12  }
  0x44   :  { %662 = dma.done.wait [#allocation3], 128  }
  0x45   :  { %663 = vsyncadd [#allocation3], 4294967168 }
  0x46   :  { %664 = dma.done.wait [#allocation6], 1600  }
  0x47   :  { %665 = vsyncadd [#allocation6], 4294965696 }
  0x48   :  { %666 = dma.done.wait [#allocation9], 1024  }
  0x49   :  { %667 = vsyncadd [#allocation9], 4294966272  ;;  %v676_v0 = vmov 0.0   ;;  %vm677_vm0 = vmmov 0   ;;  %v531_v1 = vld [vmem:[#allocation5] sm:$0xff]   ;;  %v532_v2 = vld [vmem:[#allocation5 + $0x8] sm:$0xff]  }
  0x4a   :  { %468 = vmatprep.subr.bf16.mxu0 %v676_v0  ;;  %478 = vmatprep.mubr.msk.bf16.mxu0 %vm677_vm0, %v676_v0  ;;  %v533_v3 = vld [vmem:[#allocation5 + $0x10] sm:$0xff]   ;;  %v536_v4 = vld [vmem:[#allocation7] sm:$0xff]   ;;  %v535_v5 = vld [vmem:[#allocation5 + $0x20] ss:$0 sps:$4 sm:$0xff]   ;;  %vm130_vm1 = vcmask 1043456   ;;  %vm126_vm2 = vcmask 588800  }
  0x4b   :  { %482 = vmatprep.subr.bf16.mxu1 %v676_v0  ;;  %498 = vmatprep.mubr.msk.bf16.mxu1 %vm677_vm0, %v676_v0  ;;  %v537_v6 = vld [vmem:[#allocation7 + $0x8] sm:$0xff]   ;;  %v534_v7 = vld [vmem:[#allocation5 + $0x18] sm:$0xff]   ;;  %v132_v8 = vsel %vm130_vm1, %v535_v5, 0  ;;  %v540_v13 = vld [vmem:[#allocation7 + $0x20] sm:$0xff]   ;;  %s678_s28 = smov [#allocation10]  }
  0x4c   :  { %469 = vmatpush3.bf16.msra.mxu0 %v531_v1  ;;  %483 = vmatpush3.bf16.msra.mxu1 %v536_v4  ;;  %v538_v9 = vld [vmem:[#allocation7 + $0x10] sm:$0xff]   ;;  %v539_v11 = vld [vmem:[#allocation7 + $0x18] sm:$0xff]   ;;  %v541_v14 = vld [vmem:[#allocation7 + $0x28] sm:$0xff]   ;;  %s408_s29 = sshll.u32 %s678_s28, 4  ;;  %s409_s29 = int_to_ptr.vmem [resolvable:$true] %s408_s29 }
  0x4d   :  { %470 = vmatprep.subr.bf16.mxu0 %v676_v0  ;;  %484 = vmatprep.subr.bf16.mxu1 %v676_v0  ;;  %v81_v10 = vld [vmem:[#allocation2] sm:$0xff]  ;;  %v544_v17 = vld [vmem:[#allocation8] sm:$0xff]   ;;  %v545_v18 = vld [vmem:[#allocation8 + $0x8] sm:$0xff]   ;;  %p645_p5 = scmp.lt.s32.totalorder %s409_s29, %s409_s29 }
  0x4e   :  { %v82_v12 = vpack.c.bf16 %v81_v10, %v81_v10  ;;  %v542_v15 = vld [vmem:[#allocation7 + $0x30] sm:$0xff]   ;;  %v543_v16 = vld [vmem:[#allocation7 + $0x38] sm:$0xff]   ;;  %v548_v21 = vld [vmem:[#allocation8 + $0x20] sm:$0xff]  }
  0x4f   :  { %v546_v19 = vld [vmem:[#allocation8 + $0x10] sm:$0xff]   ;;  %v547_v20 = vld [vmem:[#allocation8 + $0x18] sm:$0xff]   ;;  %v549_v22 = vld [vmem:[#allocation8 + $0x28] sm:$0xff]  }
  0x50   :  { %471 = vmatpush3.bf16.msra.mxu0 %v532_v2  ;;  %485 = vmatpush3.bf16.msra.mxu1 %v537_v6  ;;  %v419_v23 = vld [vmem:[%s826_s2] ss:$0 sm:$0xff]  ;;  %v551_v32 = vld [vmem:[#allocation8 + $0x38] sm:$0xff]  }
  0x51   :  { %472 = vmatprep.subr.bf16.mxu0 %v676_v0  ;;  %486 = vmatprep.subr.bf16.mxu1 %v676_v0  ;;  %v550_v31 = vld [vmem:[#allocation8 + $0x30] sm:$0xff]  }
  0x52   :  { %v426_v33 = vld [vmem:[%s828_s4] ss:$0 sm:$0xff]  ;;  %s640_s4 = scalar_lea.vmem %s409_s29, 64 }
  0x53   :  { %v435_v41 = vld [vmem:[%s830_s6] ss:$0 sm:$0xff]  ;;  %p641_p4 = scmp.ne.s32.totalorder %s409_s29, %s640_s4  ;;  %p646_p6 = scmp.lt.s32.totalorder %s640_s4, %s640_s4 }
  0x54   :  { %473 = vmatpush3.bf16.msra.mxu0 %v533_v3  ;;  %487 = vmatpush3.bf16.msra.mxu1 %v538_v9 }
  0x55   :  { %474 = vmatprep.subr.bf16.mxu0 %v676_v0  ;;  %488 = vmatprep.subr.bf16.mxu1 %v676_v0  ;;  %p647_p7 = por %p646_p6, %p645_p5 }
  0x57   :  { %p648_p8 = pnand %p647_p7, %p641_p4 }
  0x58   :  { %475 = vmatpush3.bf16.msra.mxu0 %v534_v7  ;;  %489 = vmatpush3.bf16.msra.mxu1 %v539_v11 }
  0x59   :  { %476 = vmatprep.subr.bf16.mxu0 %v676_v0  ;;  %490 = vmatprep.subr.bf16.mxu1 %v676_v0 }
  0x5c   :  { %477 = vmatpush3.bf16.msra.mxu0 %v132_v8  ;;  %491 = vmatpush3.bf16.msra.mxu1 %v540_v13 }
  0x5d   :  { %502 = vmatprep.subr.bf16.mxu0 %v676_v0  ;;  %492 = vmatprep.subr.bf16.mxu1 %v676_v0 }
  0x5f   :  { %479 = vmatmul.mubr.msk.bf16.vlgmr.msra.gmra.mrb[0].mxu0 %vm126_vm2, %v82_v12 }
  0x60   :  { %518 = vmatprep.mubr.msk.bf16.mxu0 %vm677_vm0, %v676_v0  ;;  %493 = vmatpush3.bf16.msra.mxu1 %v541_v14 }
  0x61   :  { %494 = vmatprep.subr.bf16.mxu1 %v676_v0  ;;  %503 = vmatpush3.bf16.msra.mxu0 %v544_v17 }
  0x62   :  { %504 = vmatprep.subr.bf16.mxu0 %v676_v0 }
  0x64   :  { %495 = vmatpush3.bf16.msra.mxu1 %v542_v15 }
  0x65   :  { %496 = vmatprep.subr.bf16.mxu1 %v676_v0  ;;  %505 = vmatpush3.bf16.msra.mxu0 %v545_v18 }
  0x66   :  { %506 = vmatprep.subr.bf16.mxu0 %v676_v0 }
  0x68   :  { %497 = vmatpush3.bf16.msra.mxu1 %v543_v16 }
  0x69   :  { %507 = vmatpush3.bf16.msra.mxu0 %v546_v19 }
  0x6a   :  { %508 = vmatprep.subr.bf16.mxu0 %v676_v0 }
  0x6d   :  { %509 = vmatpush3.bf16.msra.mxu0 %v547_v20 }
  0x6e   :  { %510 = vmatprep.subr.bf16.mxu0 %v676_v0 }
  0x71   :  { %511 = vmatpush3.bf16.msra.mxu0 %v548_v21 }
  0x72   :  { %512 = vmatprep.subr.bf16.mxu0 %v676_v0 }
  0x75   :  { %513 = vmatpush3.bf16.msra.mxu0 %v549_v22 }
  0x76   :  { %514 = vmatprep.subr.bf16.mxu0 %v676_v0 }
  0x79   :  { %515 = vmatpush3.bf16.msra.mxu0 %v550_v31 }
  0x7a   :  { %516 = vmatprep.subr.bf16.mxu0 %v676_v0 }
  0x7d   :  { %517 = vmatpush3.bf16.msra.mxu0 %v551_v32 }
 0x132   :  { %v168_v24 = vpop.f32.mrb[0].mxu0 }
 0x133   :  { %v169_v25 = vadd.f32 %v419_v23, %v168_v24  ;;  %v480_v26 = vpop.f32.mrb[1].mxu0 }
 0x134   :  { %v171_v27 = vpop.f32.mrb[2].mxu0 }
 0x135   :  { %v174_v28 = vmax.f32 %v169_v25, 0.0  ;;  %v481_v29 = vpop.f32.mrb[3].mxu0 }
 0x137   :  { %v175_v30 = vpack.c.bf16 %v174_v28, %v174_v28 }
 0x139   :  { %499 = vmatmul.mubr.bf16.vlgmr.msra.gmra.mrb[0].mxu1 %v175_v30 }
 0x20c   :  { %v281_v34 = vpop.f32.mrb[0].mxu1 }
 0x20d   :  { %v282_v35 = vadd.f32 %v426_v33, %v281_v34  ;;  %v500_v36 = vpop.f32.mrb[1].mxu1 }
 0x20e   :  { %v284_v37 = vpop.f32.mrb[2].mxu1 }
 0x20f   :  { %v287_v38 = vmax.f32 %v282_v35, 0.0  ;;  %v501_v39 = vpop.f32.mrb[3].mxu1 }
 0x211   :  { %v288_v40 = vpack.c.bf16 %v287_v38, %v287_v38 }
 0x213   :  { %519 = vmatmul.mubr.bf16.vlgmr.msra.gmra.mrb[4].mxu0 %v288_v40 }
 0x2e6   :  { %v394_v42 = vpop.f32.mrb[4].mxu0 }
 0x2e7   :  { %v395_v43 = vadd.f32 %v435_v41, %v394_v42  ;;  %v520_v44 = vpop.f32.mrb[5].mxu0 }
 0x2e8   :  { %v397_v45 = vpop.f32.mrb[6].mxu0 }
 0x2e9   :  { %v400_v46 = vpack.c.bf16 %v395_v43, %v395_v43  ;;  %v521_v47 = vpop.f32.mrb[7].mxu0 }
 0x2eb   :  { %401 = vst [vmem:[#allocation10] sm:$0xf] %v400_v46 }
 0x2ec   :  { %651 = shalt.err (!%p648_p8)
}
 0x2ed   :  { %s652_s6 = scalar_lea.hbm %s831_s7, 64 }
 0x2ee   :  { %p653_p9 = scmp.ne.s32.totalorder %s831_s7, %s652_s6  ;;  %p656_p10 = scmp.lt.u32.totalorder %s652_s6, %s831_s7 }
 0x2f0   :  { %p658_p11 = pnand %p656_p10, %p653_p9 }
 0x2f2   :  { %661 = shalt.err (!%p658_p11)
}
 0x2f3   :  { %411 = dma.vmem_to_hbm [thread:$0]  %s409_s29, 64, %s831_s7, [#allocation4]  }
 0x2f4   :  { %668 = dma.done.wait [#allocation4], 64  }
 0x2f5   :  { %669 = vsyncadd [#allocation4], 4294967232 }
 0x2f6   :  { %415 = vsyncpa [#allocation3], 1 }
 0x2f7   :  { %416 = vsyncpa [#allocation6], 1 }
 0x2f8   :  { %417 = vsyncpa [#allocation9], 1 }
 0x2f9   :  { %418 = vsyncpa [#allocation4], 1 }

</bundles_post_ra>
